<compile_context>
chip_gen: v7x
topology: tpu7x:2x2x1
jax: 0.10.0
libtpu: 0.0.40
codegen_flags: <defaults>
</compile_context>

<pallas_src>
import functools

import jax
import jax.numpy as jnp
from jax.experimental import pallas as pl
from jax.experimental.pallas import tpu as pltpu

HIDDEN = 8


def _round_up(n, m):
    return ((n + m - 1) // m) * m


def _cdiv(a, b):
    return -(-a // b)


def _value_net_kernel(state_size, xT_ref, wb_ref, oT_ref):
    """xT_ref: (S, TM) bf16 (batch on lanes); wb_ref: (8, S+21) f32 packed
    [W1 | W2 | W3 | W4^T | b1 | b2 | b3 | b4-in-row-0]; oT_ref: (1, TM) f32."""
    s = state_size
    x = xT_ref[...]                                                  # (S, TM) bf16

    w1 = wb_ref[:, 0:s].astype(jnp.bfloat16)                         # (8, S)
    w2 = wb_ref[:, s:s + HIDDEN].astype(jnp.bfloat16)                # (8, 8)
    w3 = wb_ref[:, s + HIDDEN:s + 2 * HIDDEN].astype(jnp.bfloat16)   # (8, 8)
    w4 = wb_ref[:, s + 2 * HIDDEN:s + 2 * HIDDEN + 1]                # (8, 1) f32 == W4^T
    b1 = wb_ref[:, s + 2 * HIDDEN + 1:s + 2 * HIDDEN + 2]            # (8, 1) f32
    b2 = wb_ref[:, s + 2 * HIDDEN + 2:s + 2 * HIDDEN + 3]
    b3 = wb_ref[:, s + 2 * HIDDEN + 3:s + 2 * HIDDEN + 4]
    b4 = wb_ref[0:1, s + 2 * HIDDEN + 4:s + 2 * HIDDEN + 5]          # (1, 1) f32

    # Layer 1..3: bf16 MXU matmuls with f32 accumulation, bias broadcast over
    # the lane (batch) axis, ReLU on the VPU.
    h = jnp.dot(w1, x, preferred_element_type=jnp.float32) + b1
    h = jnp.maximum(h, 0.0)
    h = jnp.dot(w2, h.astype(jnp.bfloat16), preferred_element_type=jnp.float32) + b2
    h = jnp.maximum(h, 0.0)
    h = jnp.dot(w3, h.astype(jnp.bfloat16), preferred_element_type=jnp.float32) + b3
    h = jnp.maximum(h, 0.0)

    # Layer 4: (1, 8) @ (8, TM) done as a VPU multiply + XLU sublane reduce
    # (no cross-lane mixing -> padded batch lanes stay isolated).
    out = jnp.sum(w4 * h, axis=0, keepdims=True) + b4                # (1, TM) f32
    oT_ref[...] = out.astype(oT_ref.dtype)


def _pick_tile(batch, state_size, max_tile):
    # Bytes of VMEM per batch column: double-buffered bf16 x block (2*S*2),
    # double-buffered f32 out block (2*4), ~6 live f32 (8, TM) intermediates.
    per_col = 4 * state_size + 8 + 192
    budget = 24 * 1024 * 1024                 # headroom under the 32 MiB request
    tm = min(max_tile, budget // per_col)
    tm = max(128, (tm // 128) * 128)          # lane-dense (multiple of 128)
    # Keep >= 2 batch tiles whenever the batch allows it, so the "parallel"
    # grid axis can shard across v7x's two TensorCores.
    two_tiles = _round_up(max(_cdiv(batch, 2), 1), 128)
    return min(tm, two_tiles)


@functools.partial(jax.jit, static_argnames=("max_tile",))
def value_network_forward(x, params, *, max_tile=65536):
    """x: (batch, state_size) float32.  params: w1..w4 (out, in), b1..b4 (out, 1).

    Returns (batch, 1) float32 matching the PyTorch ValueNetwork forward.
    """
    batch, state_size = x.shape
    tm = _pick_tile(batch, state_size, max_tile)
    padded = _round_up(max(batch, 1), 128)    # tiny pad; tm always <= padded
    num_tiles = _cdiv(padded, tm)

    # Batch on the lane axis, shipped as bf16 (MXU operand, half the HBM
    # traffic of f32).  Pad only up to the next 128 multiple.
    x_bf = x.astype(jnp.bfloat16)
    if padded != batch:
        x_bf = jnp.pad(x_bf, ((0, padded - batch), (0, 0)))
    xT = jnp.transpose(x_bf)                  # (state_size, padded)

    # Pack all weights/biases into one VMEM-resident f32 block:
    #   [W1 | W2 | W3 | W4^T | b1 | b2 | b3 | b4-in-row-0]  ->  (8, S + 21)
    b4_col = jnp.zeros((HIDDEN, 1), jnp.float32).at[0, 0].set(params["b4"][0, 0])
    wb = jnp.concatenate(
        [params["w1"], params["w2"], params["w3"], params["w4"].T,
         params["b1"], params["b2"], params["b3"], b4_col],
        axis=1).astype(jnp.float32)

    flops = 2 * padded * (state_size * HIDDEN + 2 * HIDDEN * HIDDEN + HIDDEN)
    bytes_accessed = padded * (state_size * 2 + 4) + int(wb.size) * 4

    outT = pl.pallas_call(
        functools.partial(_value_net_kernel, state_size),
        out_shape=jax.ShapeDtypeStruct((1, padded), jnp.float32),
        grid=(num_tiles,),
        in_specs=[
            pl.BlockSpec((state_size, tm), lambda i: (0, i)),
            # Constant index_map -> fetched once, stays VMEM-resident.
            pl.BlockSpec(wb.shape, lambda i: (0, 0)),
        ],
        out_specs=pl.BlockSpec((1, tm), lambda i: (0, i)),
        compiler_params=pltpu.CompilerParams(
            dimension_semantics=("parallel",),     # shard batch tiles over TCs
            vmem_limit_bytes=32 * 1024 * 1024,     # > v5e default, <= v7x physical
        ),
        cost_estimate=pl.CostEstimate(
            flops=flops, transcendentals=0, bytes_accessed=bytes_accessed),
    )(xT, wb)

    # (1, padded) -> (batch, 1): drop padding, restore the PyTorch contract.
    return jnp.reshape(outT[:, :batch], (batch, 1))


def init_value_network_params(key, state_size, hidden_size=HIDDEN):
    """nn.Linear-style init (uniform +/- 1/sqrt(fan_in)); weights in PyTorch
    (out, in) layout, biases as (out, 1)."""
    dims = [(state_size, hidden_size),
            (hidden_size, hidden_size),
            (hidden_size, hidden_size),
            (hidden_size, 1)]
    params = {}
    for i, (fan_in, fan_out) in enumerate(dims, start=1):
        key, kw, kb = jax.random.split(key, 3)
        bound = 1.0 / jnp.sqrt(jnp.float32(fan_in))
        params[f"w{i}"] = jax.random.uniform(
            kw, (fan_out, fan_in), jnp.float32, -bound, bound)
        params[f"b{i}"] = jax.random.uniform(
            kb, (fan_out, 1), jnp.float32, -bound, bound)
    return params


def _reference_forward(x, params):
    h = x
    for i in range(1, 4):
        h = jnp.maximum(h @ params[f"w{i}"].T + params[f"b{i}"].T, 0.0)
    return h @ params["w4"].T + params["b4"].T


if __name__ == "__main__":
    key = jax.random.PRNGKey(0)

    # Small deterministic example matching the module: (batch=2, state_size=4).
    batch, state_size = 2, 4
    k_params, k_x, k_x2 = jax.random.split(key, 3)
    params = init_value_network_params(k_params, state_size)
    x = jax.random.normal(k_x, (batch, state_size), jnp.float32)

    out = jax.block_until_ready(value_network_forward(x, params))
    ref = _reference_forward(x, params)
    assert out.shape == (batch, 1)
    # bf16 MXU operands with f32 accumulation -> relaxed tolerance vs f32 ref.
    assert jnp.allclose(out, ref, atol=3e-2, rtol=3e-2)

    # Second check: multiple grid tiles + a 128-aligned partial edge block
    # (batch=300 -> padded=384, tm=256 -> tiles of 256 and 128-of-256).
    batch2 = 300
    x2 = jax.random.normal(k_x2, (batch2, state_size), jnp.float32)
    out2 = jax.block_until_ready(value_network_forward(x2, params, max_tile=256))
    ref2 = _reference_forward(x2, params)
    assert out2.shape == (batch2, 1)
    assert jnp.allclose(out2, ref2, atol=3e-2, rtol=3e-2)

    print("KERNEL_OK")
</pallas_src>

<mosaic_0001>
module attributes {stable_mosaic.version = 11 : i64} {
  func.func @_value_net_kernel(%arg0: i32, %arg1: memref<4x128xbf16, #tpu.memory_space<vmem>>, %arg2: memref<8x25xf32, #tpu.memory_space<vmem>>, %arg3: memref<1x128xf32, #tpu.memory_space<vmem>>) attributes {dimension_semantics = [#tpu.dimension_semantics<parallel>], iteration_bounds = array<i64: 1>, scalar_prefetch = 0 : i64, scratch_operands = 0 : i64, tpu.core_type = #tpu.core_type<tc>, window_params = [{transform_indices = @transform_0, window_bounds = array<i64: 4, 128>}, {pipeline_mode = #tpu.pipeline_mode<synchronous>, transform_indices = @transform_1, window_bounds = array<i64: 8, 25>}, {transform_indices = @transform_2, window_bounds = array<i64: 1, 128>}]} {
    %c0 = arith.constant 0 : index
    %c0_0 = arith.constant 0 : index
    %0 = vector.load %arg1[%c0, %c0_0] : memref<4x128xbf16, #tpu.memory_space<vmem>>, vector<4x128xbf16>
    %c0_1 = arith.constant 0 : index
    %c0_2 = arith.constant 0 : index
    %1 = vector.load %arg2[%c0_1, %c0_2] : memref<8x25xf32, #tpu.memory_space<vmem>>, vector<8x4xf32>
    %2 = arith.truncf %1 : vector<8x4xf32> to vector<8x4xbf16>
    %c0_3 = arith.constant 0 : index
    %c4 = arith.constant 4 : index
    %3 = vector.load %arg2[%c0_3, %c4] : memref<8x25xf32, #tpu.memory_space<vmem>>, vector<8x8xf32>
    %4 = arith.truncf %3 : vector<8x8xf32> to vector<8x8xbf16>
    %c0_4 = arith.constant 0 : index
    %c12 = arith.constant 12 : index
    %5 = vector.load %arg2[%c0_4, %c12] : memref<8x25xf32, #tpu.memory_space<vmem>>, vector<8x8xf32>
    %6 = arith.truncf %5 : vector<8x8xf32> to vector<8x8xbf16>
    %c0_5 = arith.constant 0 : index
    %c20 = arith.constant 20 : index
    %7 = vector.load %arg2[%c0_5, %c20] : memref<8x25xf32, #tpu.memory_space<vmem>>, vector<8x1xf32>
    %c0_6 = arith.constant 0 : index
    %c21 = arith.constant 21 : index
    %8 = vector.load %arg2[%c0_6, %c21] : memref<8x25xf32, #tpu.memory_space<vmem>>, vector<8x1xf32>
    %c0_7 = arith.constant 0 : index
    %c22 = arith.constant 22 : index
    %9 = vector.load %arg2[%c0_7, %c22] : memref<8x25xf32, #tpu.memory_space<vmem>>, vector<8x1xf32>
    %c0_8 = arith.constant 0 : index
    %c23 = arith.constant 23 : index
    %10 = vector.load %arg2[%c0_8, %c23] : memref<8x25xf32, #tpu.memory_space<vmem>>, vector<8x1xf32>
    %c0_9 = arith.constant 0 : index
    %c24 = arith.constant 24 : index
    %11 = vector.load %arg2[%c0_9, %c24] : memref<8x25xf32, #tpu.memory_space<vmem>>, vector<1x1xf32>
    %cst = arith.constant dense<0.000000e+00> : vector<8x128xf32>
    %12 = tpu.matmul %2, %0, %cst {dimension_numbers = #tpu.dot_dimension_numbers<[1], [0], [0], [1], [0, 0, 1, 1], [], []>} : vector<8x4xbf16>, vector<4x128xbf16>, vector<8x128xf32> -> vector<8x128xf32>
    %13 = vector.broadcast %8 : vector<8x1xf32> to vector<8x128xf32>
    %14 = arith.addf %12, %13 : vector<8x128xf32>
    %cst_10 = arith.constant 0.000000e+00 : f32
    %15 = vector.broadcast %cst_10 : f32 to vector<8x128xf32>
    %16 = arith.maximumf %14, %15 : vector<8x128xf32>
    %17 = arith.truncf %16 : vector<8x128xf32> to vector<8x128xbf16>
    %cst_11 = arith.constant dense<0.000000e+00> : vector<8x128xf32>
    %18 = tpu.matmul %4, %17, %cst_11 {dimension_numbers = #tpu.dot_dimension_numbers<[1], [0], [0], [1], [0, 0, 1, 1], [], []>} : vector<8x8xbf16>, vector<8x128xbf16>, vector<8x128xf32> -> vector<8x128xf32>
    %19 = vector.broadcast %9 : vector<8x1xf32> to vector<8x128xf32>
    %20 = arith.addf %18, %19 : vector<8x128xf32>
    %cst_12 = arith.constant 0.000000e+00 : f32
    %21 = vector.broadcast %cst_12 : f32 to vector<8x128xf32>
    %22 = arith.maximumf %20, %21 : vector<8x128xf32>
    %23 = arith.truncf %22 : vector<8x128xf32> to vector<8x128xbf16>
    %cst_13 = arith.constant dense<0.000000e+00> : vector<8x128xf32>
    %24 = tpu.matmul %6, %23, %cst_13 {dimension_numbers = #tpu.dot_dimension_numbers<[1], [0], [0], [1], [0, 0, 1, 1], [], []>} : vector<8x8xbf16>, vector<8x128xbf16>, vector<8x128xf32> -> vector<8x128xf32>
    %25 = vector.broadcast %10 : vector<8x1xf32> to vector<8x128xf32>
    %26 = arith.addf %24, %25 : vector<8x128xf32>
    %cst_14 = arith.constant 0.000000e+00 : f32
    %27 = vector.broadcast %cst_14 : f32 to vector<8x128xf32>
    %28 = arith.maximumf %26, %27 : vector<8x128xf32>
    %29 = vector.broadcast %7 : vector<8x1xf32> to vector<8x128xf32>
    %30 = arith.mulf %29, %28 : vector<8x128xf32>
    %cst_15 = arith.constant dense<0.000000e+00> : vector<128xf32>
    %31 = vector.multi_reduction <add>, %30, %cst_15 [0] : vector<8x128xf32> to vector<128xf32>
    %32 = vector.shape_cast %31 : vector<128xf32> to vector<1x128xf32>
    %33 = vector.broadcast %11 : vector<1x1xf32> to vector<1x128xf32>
    %34 = arith.addf %32, %33 : vector<1x128xf32>
    %c0_16 = arith.constant 0 : index
    %c0_17 = arith.constant 0 : index
    %35 = vector.load %arg3[%c0_16, %c0_17] : memref<1x128xf32, #tpu.memory_space<vmem>>, vector<1x128xf32>
    tpu.vector_store %arg3[%c0_16, %c0_17], %34 {strides = array<i32>} : memref<1x128xf32, #tpu.memory_space<vmem>>, vector<1x128xf32>,
    return
  }
  func.func @transform_0(%arg0: i32) -> (i32, i32) {
    %c0_i32 = arith.constant 0 : i32
    %c0_i32_0 = arith.constant 0 : i32
    return %c0_i32, %arg0 : i32, i32
  }
  func.func @transform_1(%arg0: i32) -> (i32, i32) {
    %c0_i32 = arith.constant 0 : i32
    %c0_i32_0 = arith.constant 0 : i32
    %c0_i32_1 = arith.constant 0 : i32
    return %c0_i32, %c0_i32_0 : i32, i32
  }
  func.func @transform_2(%arg0: i32) -> (i32, i32) {
    %c0_i32 = arith.constant 0 : i32
    %c0_i32_0 = arith.constant 0 : i32
    return %c0_i32, %arg0 : i32, i32
  }
}

</mosaic_0001>

<bundles_post_ra>
// kernel: value_network_forward.1
= control target key start
LH: loop header
LB: loop body
LE: loop exit
PB: predicated region body
PF: predicated region fallthrough
CT: control target
= control target key end

     0   :  { %vm25_vm0 = vcmask 1041408   ;;  %v245_v0 = vmov 0.0   ;;  %vm246_vm1 = vmmov 0   ;;  %v247_v5 = vmov 21   ;;  %s250_s13 = smov 116   ;;  %s288_s0 = inlined_call_operand.vmem [shape: bf16[4,128], index: 0, kind: input, shape index: {}]   ;;  %s289_s1 = inlined_call_operand.vmem [shape: f32[8,25], index: 1, kind: input, shape index: {}]   ;;  %s290_s2 = inlined_call_operand.vmem [shape: f32[1,128], index: 2, kind: output, shape index: {}]  }
   0x1   :  { %212 = vmatprep.subr.bf16.mxu0 %v245_v0  ;;  %v12_v1 = vld [vmem:[%s288_s0] sm:$0x3]  ;;  %214 = vmatprep.mubr.msk.bf16.mxu0 %vm246_vm1, %v245_v0  ;;  %vm21_vm2 = vcmask 31744   ;;  %s248_s0 = smov 124   ;;  %v249_v6 = vmov 22   ;;  %vm82_vm3 = vcmask 1043456  }
   0x2   :  { %v13_v2 = vld [vmem:[%s289_s1] sm:$0xff]  ;;  %v27_v3 = vsel %vm25_vm0, %v12_v1, 0  ;;  %239 = vset.pattern.permute.xlu0 %v247_v5  ;;  %218 = vmatprep.subr.bf16.mxu1 %v245_v0  ;;  %vm78_vm4 = vcmask 64512   ;;  %v251_v17 = vmov 23   ;;  %v252_v18 = vmov 20  }
   0x3   :  { %v14_v4 = vpack.c.bf16 %v13_v2, %v13_v2  ;;  %213 = vmatpush3.bf16.msra.mxu0 %v27_v3  ;;  %18 = vperm.xlu0 %239, %v13_v2   ;;  %v15_v19 = vld [vmem:[%s289_s1] sm:$0x1]  ;;  %v253_v20 = vmov 24  }
   0x4   :  { %220 = vmatprep.mubr.msk.bf16.mxu1 %vm246_vm1, %v245_v0  ;;  %224 = vmatprep.subr.bf16.mxu0 %v245_v0 }
   0x5   :  { %240 = vset.pattern.permute.xlu1 %v249_v6 }
   0x6   :  { %215 = vmatmul.mubr.msk.bf16.vlgmr.msra.gmra.mrb[0].mxu0 %vm21_vm2, %v14_v4  ;;  %72 = vperm.xlu1 %240, %v13_v2  }
   0x7   :  { %76 = vrot.lane.b32.xlu0 %v14_v4, %s248_s0  ;;  %226 = vmatprep.mubr.msk.bf16.mxu0 %vm246_vm1, %v245_v0 }
   0x8   :  { %241 = vset.pattern.permute.xlu0 %v251_v17 }
   0xa   :  { %132 = vrot.lane.b32.xlu1 %v14_v4, %s250_s13 }
   0xb   :  { %242 = vset.pattern.permute.xlu1 %v252_v18  ;;  %129 = vperm.xlu0 %241, %v13_v2  }
   0xe   :  { %182 = vperm.xlu1 %242, %v13_v2  }
   0xf   :  { %244 = vset.pattern.permute.xlu0 %v253_v20 }
  0x12   :  { %243 = vset.pattern.permute.xlu1 %v253_v20 }
  0x13   :  { %194 = vperm.xlu1 %243, %v15_v19  }
  0x82   :  { %v19_v7 = vpop.permute.xlu0 %18 }
  0x85   :  { %v73_v21 = vpop.permute.xlu1 %72 }
  0x86   :  { %v77_v16 = vpop.permute.xlu0 %76 }
  0x89   :  { %v133_v30 = vpop.permute.xlu1 %132 }
  0x8a   :  { %v130_v31 = vpop.permute.xlu0 %129 }
  0x8d   :  { %v183_v35 = vpop.permute.xlu1 %182 }
  0x92   :  { %v195_v45 = vpop.permute.xlu1 %194 }
  0xd9   :  { %v63_v8 = vpop.f32.mrb[0].mxu0 }
  0xda   :  { %v64_v9 = vadd.f32 %v63_v8, %v19_v7  ;;  %v216_v10 = vpop.f32.mrb[1].mxu0 }
  0xdb   :  { %v66_v11 = vpop.f32.mrb[2].mxu0 }
  0xdc   :  { %v69_v12 = vmax.f32 %v64_v9, 0.0  ;;  %v217_v13 = vpop.f32.mrb[3].mxu0 }
  0xde   :  { %v70_v14 = vpack.c.bf16 %v69_v12, %v69_v12 }
  0xe0   :  { %v84_v15 = vsel %vm82_vm3, %v70_v14, 0 }
  0xe1   :  { %219 = vmatpush3.bf16.msra.mxu1 %v84_v15 }
  0xe4   :  { %221 = vmatmul.mubr.msk.bf16.vlgmr.msra.gmra.mrb[0].mxu1 %vm78_vm4, %v77_v16 }
 0x1b7   :  { %v120_v22 = vpop.f32.mrb[0].mxu1 }
 0x1b8   :  { %v121_v23 = vadd.f32 %v120_v22, %v73_v21  ;;  %v222_v24 = vpop.f32.mrb[1].mxu1 }
 0x1b9   :  { %v123_v25 = vpop.f32.mrb[2].mxu1 }
 0x1ba   :  { %v126_v26 = vmax.f32 %v121_v23, 0.0  ;;  %v223_v27 = vpop.f32.mrb[3].mxu1 }
 0x1bc   :  { %v127_v28 = vpack.c.bf16 %v126_v26, %v126_v26 }
 0x1be   :  { %v138_v29 = vsel %vm82_vm3, %v127_v28, 0 }
 0x1bf   :  { %225 = vmatpush3.bf16.msra.mxu0 %v138_v29 }
 0x1c2   :  { %227 = vmatmul.mubr.msk.bf16.vlgmr.msra.gmra.mrb[4].mxu0 %vm78_vm4, %v133_v30 }
 0x295   :  { %v174_v32 = vpop.f32.mrb[4].mxu0 }
 0x296   :  { %v175_v33 = vadd.f32 %v174_v32, %v130_v31  ;;  %v228_v34 = vpop.f32.mrb[5].mxu0 }
 0x297   :  { %v177_v36 = vpop.f32.mrb[6].mxu0 }
 0x298   :  { %v180_v37 = vmax.f32 %v175_v33, 0.0  ;;  %v229_v38 = vpop.f32.mrb[7].mxu0 }
 0x29a   :  { %v185_v39 = vmul.f32 %v183_v35, %v180_v37 }
 0x29c   :  { %v186_v40 = vrot.slane %v185_v39, 4 }
 0x29e   :  { %v187_v41 = vadd.f32 %v186_v40, %v185_v39 }
 0x2a0   :  { %v188_v42 = vrot.slane %v187_v41, 2 }
 0x2a2   :  { %v189_v43 = vadd.f32 %v188_v42, %v187_v41 }
 0x2a4   :  { %v190_v44 = vrot.slane %v189_v43, 1 }
 0x2a6   :  { %v191_v46 = vadd.f32 %v190_v44, %v189_v43 }
 0x2a8   :  { %v197_v47 = vadd.f32 %v195_v45, %v191_v46 }
 0x2aa   :  { %198 = vst [vmem:[%s290_s2] sm:$0x1] %v197_v47 }

</bundles_post_ra>
